<compile_context>
chip_gen: v7x
topology: tpu7x:2x2x1
jax: 0.10.0
libtpu: 0.0.40
codegen_flags: <defaults>
</compile_context>

<pallas_src>
import jax
import jax.numpy as jnp
from jax import lax
from jax.experimental import pallas as pl
from jax.experimental.pallas import tpu as pltpu


def _round_up(x, m):
    return (x + m - 1) // m * m


# ----------------------------------------------------------------------------
# Kernels
# ----------------------------------------------------------------------------

def _gate(z, hp):
    # For small hidden sizes the single EUP slot is the binding unit; the tanh
    # form is one EUP push per element (sigmoid(z) == 0.5*tanh(0.5*z) + 0.5).
    if hp <= 256:
        return 0.5 * jnp.tanh(0.5 * z) + 0.5
    return jax.nn.sigmoid(z)


def _highway_layer(x, w, b, hp):
    # One fused (Hp, 2*Hp) MXU matmul per layer; f32 accumulation.
    pre = jnp.dot(x.astype(w.dtype), w, preferred_element_type=jnp.float32) + b
    t = jnp.maximum(pre[:, :hp], 0.0)      # transform half (VPU)
    g = _gate(pre[:, hp:], hp)             # gate half (EUP)
    return x + g * (t - x)                 # == g*t + (1-g)*x


def highway_resident_kernel(x_ref, w_ref, b_ref, o_ref):
    """All layer weights resident in VMEM; layer loop fully unrolled."""
    hp = x_ref.shape[-1]
    num_layers = w_ref.shape[0]
    x = x_ref[...].astype(jnp.float32)
    x = lax.fori_loop(
        0, num_layers,
        lambda l, xc: _highway_layer(xc, w_ref[l], b_ref[l], hp),
        x, unroll=True)
    o_ref[...] = x.astype(o_ref.dtype)


def highway_stream_kernel(x_ref, w_ref, b_ref, o_ref, acc_ref):
    """Per-layer weight streaming: inner 'arbitrary' grid axis over layers,
    f32 residual carried in a VMEM scratch across the layer axis."""
    hp = x_ref.shape[-1]
    l = pl.program_id(1)

    @pl.when(l == 0)
    def _():
        acc_ref[...] = x_ref[...].astype(jnp.float32)

    x = _highway_layer(acc_ref[...], w_ref[0], b_ref[0], hp)
    acc_ref[...] = x

    @pl.when(l == pl.num_programs(1) - 1)
    def _():
        o_ref[...] = x.astype(o_ref.dtype)


# ----------------------------------------------------------------------------
# One-time parameter preparation (hoisted out of the per-call hot path)
# ----------------------------------------------------------------------------

def prepare_highway_params(wt, bt, wg, bg, *, use_bf16_matmul=False):
    """Fuse [Wt | Wg] into a lane-dense (L, Hp, 2*Hp) stack + f32 bias stack.

    wt/wg: (L, H, H) already in (in, out) layout (transposed nn.Linear.weight);
    bt/bg: (L, H).  Zero padding is exact: padded input columns / weight
    rows+cols / biases are 0, so padded features stay 0 through every layer
    (relu(0)=0, g*(0-0)=0).  With use_bf16_matmul=True the weights are stored
    in bf16 (MXU-native on v5e/v6e/v7x); accumulation stays f32 in the kernel.
    This is an explicit opt-in (changes numerics slightly), never automatic.
    """
    L, H, _ = wt.shape
    Hp = max(_round_up(H, 128), 128)
    w_dtype = jnp.bfloat16 if use_bf16_matmul else wt.dtype
    w_fused = jnp.zeros((L, Hp, 2 * Hp), dtype=w_dtype)
    w_fused = w_fused.at[:, :H, :H].set(wt.astype(w_dtype))
    w_fused = w_fused.at[:, :H, Hp:Hp + H].set(wg.astype(w_dtype))
    b_fused = jnp.zeros((L, 1, 2 * Hp), dtype=jnp.float32)
    b_fused = b_fused.at[:, 0, :H].set(bt.astype(jnp.float32))
    b_fused = b_fused.at[:, 0, Hp:Hp + H].set(bg.astype(jnp.float32))
    return w_fused, b_fused, H


# ----------------------------------------------------------------------------
# Wrapper
# ----------------------------------------------------------------------------

def _tpu_vmem_capacity():
    try:
        return int(pltpu.get_tpu_info().vmem_capacity_bytes)
    except Exception:
        return 64 << 20      # conservative default (v7x per-TC VMEM)


def _pick_row_tile(M, min_steps, max_tile):
    """Largest multiple-of-8 row tile <= max_tile giving >= min_steps grid
    steps when the work allows; prefers an exact divisor of M (no row pad)."""
    cap = max(_round_up(min(max_tile, _round_up(M, 8)), 8), 8)
    tm = cap
    while tm > 64 and pl.cdiv(M, tm) < min_steps:
        tm = max(_round_up(tm // 2, 8), 8)
    if M % 8 == 0:
        for cand in range(tm, max(tm // 2, 7), -8):
            if M % cand == 0:
                return cand
    return tm


def highway_encoder(x, w_fused, b_fused, hidden_size, *, max_row_tile=512):
    """x: (B, S, H); w_fused/b_fused from prepare_highway_params."""
    B, S, H = x.shape
    assert H == hidden_size
    L, Hp, Hp2 = w_fused.shape
    assert Hp2 == 2 * Hp
    M = B * S

    # Generation-aware VMEM budget.
    vmem_cap = _tpu_vmem_capacity()
    budget = int(0.85 * vmem_cap)
    # v7x is the only generation with <= 64 MiB per-TC VMEM and it has 2 TCs:
    # target >= 2 grid steps per core there, >= 2 total on v5e/v6e.
    multi_core = vmem_cap <= (80 << 20)
    min_steps = 4 if multi_core else 2

    w_bytes = w_fused.size * w_fused.dtype.itemsize
    b_bytes = b_fused.size * b_fused.dtype.itemsize

    # Keep the f32 per-tile intermediates (~6 * tm * Hp * 4B) reasonable for
    # very wide models before picking the row tile.
    max_tile = max_row_tile
    while max_tile > 64 and 6 * max_tile * Hp * 4 > budget // 2:
        max_tile //= 2

    tm = _pick_row_tile(M, min_steps, max_tile)
    Mp = _round_up(M, tm)
    n_rows = Mp // tm

    x2 = x.reshape(M, H)
    if Mp != M or Hp != H:       # skipped whenever H % 128 == 0 and tm | M
        x2 = jnp.pad(x2, ((0, Mp - M), (0, Hp - H)))

    io_bytes = 2 * 2 * tm * Hp * x.dtype.itemsize      # double-buffered in+out tiles
    interm_bytes = 6 * tm * Hp * 4                     # f32 intermediates headroom

    # Resident path cost with Buffered(1) single-buffered weight/bias blocks.
    resident_bytes = w_bytes + b_bytes + io_bytes + interm_bytes
    use_resident = resident_bytes <= budget

    if use_resident:
        grid = (n_rows,)
        dim_sem = ("parallel",)
        kernel = highway_resident_kernel
        grid_spec = pltpu.PrefetchScalarGridSpec(
            num_scalar_prefetch=0,
            grid=grid,
            in_specs=[
                pl.BlockSpec((tm, Hp), lambda i: (i, 0)),
                # Constant index_map -> DMA'd once across the grid; Buffered(1)
                # halves the VMEM reservation of these never-changing blocks.
                pl.BlockSpec((L, Hp, 2 * Hp), lambda i: (0, 0, 0),
                             pipeline_mode=pl.Buffered(1)),
                pl.BlockSpec((L, 1, 2 * Hp), lambda i: (0, 0, 0),
                             pipeline_mode=pl.Buffered(1)),
            ],
            out_specs=pl.BlockSpec((tm, Hp), lambda i: (i, 0)),
        )
        vmem_need = resident_bytes
    else:
        # Weight-streaming fallback (large models on 64 MiB v7x VMEM): weights
        # double-buffered per layer; next layer's DMA overlaps this matmul.
        grid = (n_rows, L)
        dim_sem = ("parallel", "arbitrary")
        kernel = highway_stream_kernel
        grid_spec = pltpu.PrefetchScalarGridSpec(
            num_scalar_prefetch=0,
            grid=grid,
            in_specs=[
                pl.BlockSpec((tm, Hp), lambda i, l: (i, 0)),
                pl.BlockSpec((1, Hp, 2 * Hp), lambda i, l: (l, 0, 0)),
                pl.BlockSpec((1, 1, 2 * Hp), lambda i, l: (l, 0, 0)),
            ],
            out_specs=pl.BlockSpec((tm, Hp), lambda i, l: (i, 0)),
            scratch_shapes=[pltpu.VMEM((tm, Hp), jnp.float32)],
        )
        per_layer_w = 2 * (Hp * 2 * Hp * w_fused.dtype.itemsize + 2 * Hp * 4)
        vmem_need = per_layer_w + io_bytes + interm_bytes + tm * Hp * 4

    vmem_limit = int(min(max(vmem_need + (4 << 20), 32 << 20), budget))

    out = pl.pallas_call(
        kernel,
        out_shape=jax.ShapeDtypeStruct((Mp, Hp), x.dtype),
        grid_spec=grid_spec,
        compiler_params=pltpu.CompilerParams(
            dimension_semantics=dim_sem,
            vmem_limit_bytes=vmem_limit),
    )(x2, w_fused, b_fused)

    return out[:M, :H].reshape(B, S, H)


# ----------------------------------------------------------------------------
# Pure-JAX reference (same math as the PyTorch module)
# ----------------------------------------------------------------------------

def highway_encoder_ref(x, wt, bt, wg, bg):
    L = wt.shape[0]
    for l in range(L):
        t = jnp.maximum(x @ wt[l] + bt[l], 0.0)
        g = jax.nn.sigmoid(x @ wg[l] + bg[l])
        x = g * t + (1.0 - g) * x
    return x


if __name__ == "__main__":
    num_layers = 2
    batch, seq, hidden = 2, 8, 32

    key = jax.random.PRNGKey(0)
    kx, kwt, kbt, kwg, kbg = jax.random.split(key, 5)

    x = jax.random.normal(kx, (batch, seq, hidden), dtype=jnp.float32)
    # nn.Linear(hidden, hidden) weight is (out, in); we store the transpose
    # (in, out) so the kernel computes x @ W directly.
    scale = 1.0 / jnp.sqrt(hidden)
    wt = jax.random.uniform(kwt, (num_layers, hidden, hidden),
                            minval=-scale, maxval=scale, dtype=jnp.float32)
    bt = jax.random.uniform(kbt, (num_layers, hidden),
                            minval=-scale, maxval=scale, dtype=jnp.float32)
    wg = jax.random.uniform(kwg, (num_layers, hidden, hidden),
                            minval=-scale, maxval=scale, dtype=jnp.float32)
    bg = jax.random.uniform(kbg, (num_layers, hidden),
                            minval=-scale, maxval=scale, dtype=jnp.float32)

    # One-time parameter preparation (hoisted out of the per-call hot path).
    w_fused, b_fused, H = prepare_highway_params(wt, bt, wg, bg,
                                                 use_bf16_matmul=False)

    out = highway_encoder(x, w_fused, b_fused, H)
    out = jax.block_until_ready(out)

    ref = highway_encoder_ref(x, wt, bt, wg, bg)
    assert out.shape == (batch, seq, hidden)
    assert jnp.allclose(out, ref, atol=1e-5, rtol=1e-5), "mismatch vs reference"

    print("KERNEL_OK")
</pallas_src>

<mosaic_0001>
module attributes {stable_mosaic.version = 11 : i64} {
  func.func @highway_resident_kernel(%arg0: i32, %arg1: memref<16x128xf32, #tpu.memory_space<vmem>>, %arg2: memref<2x128x256xf32, #tpu.memory_space<vmem>>, %arg3: memref<2x1x256xf32, #tpu.memory_space<vmem>>, %arg4: memref<16x128xf32, #tpu.memory_space<vmem>>) attributes {dimension_semantics = [#tpu.dimension_semantics<parallel>], iteration_bounds = array<i64: 1>, scalar_prefetch = 0 : i64, scratch_operands = 0 : i64, tpu.core_type = #tpu.core_type<tc>, window_params = [{transform_indices = @transform_0, window_bounds = array<i64: 16, 128>}, {pipeline_mode = #tpu.pipeline_mode<synchronous>, transform_indices = @transform_1, window_bounds = array<i64: 2, 128, 256>}, {pipeline_mode = #tpu.pipeline_mode<synchronous>, transform_indices = @transform_2, window_bounds = array<i64: 2, 1, 256>}, {transform_indices = @transform_3, window_bounds = array<i64: 16, 128>}]} {
    %c0 = arith.constant 0 : index
    %c0_0 = arith.constant 0 : index
    %0 = vector.load %arg1[%c0, %c0_0] : memref<16x128xf32, #tpu.memory_space<vmem>>, vector<16x128xf32>
    %c0_i32 = arith.constant 0 : i32
    %1 = arith.index_cast %c0_i32 : i32 to index
    %c0_1 = arith.constant 0 : index
    %c0_2 = arith.constant 0 : index
    %2 = vector.load %arg2[%1, %c0_1, %c0_2] : memref<2x128x256xf32, #tpu.memory_space<vmem>>, vector<1x128x256xf32>
    %3 = vector.shape_cast %2 : vector<1x128x256xf32> to vector<128x256xf32>
    %4 = arith.index_cast %c0_i32 : i32 to index
    %c0_3 = arith.constant 0 : index
    %c0_4 = arith.constant 0 : index
    %5 = vector.load %arg3[%4, %c0_3, %c0_4] : memref<2x1x256xf32, #tpu.memory_space<vmem>>, vector<1x1x256xf32>
    %6 = vector.shape_cast %5 : vector<1x1x256xf32> to vector<1x256xf32>
    %cst = arith.constant dense<0.000000e+00> : vector<16x256xf32>
    %7 = tpu.matmul %0, %3, %cst {dimension_numbers = #tpu.dot_dimension_numbers<[1], [0], [0], [1], [0, 0, 1, 1], [], []>} : vector<16x128xf32>, vector<128x256xf32>, vector<16x256xf32> -> vector<16x256xf32>
    %8 = vector.broadcast %6 : vector<1x256xf32> to vector<16x256xf32>
    %9 = arith.addf %7, %8 : vector<16x256xf32>
    %10 = vector.extract_strided_slice %9 {offsets = [0, 0], sizes = [16, 128], strides = [1, 1]} : vector<16x256xf32> to vector<16x128xf32>
    %cst_5 = arith.constant 0.000000e+00 : f32
    %11 = vector.broadcast %cst_5 : f32 to vector<16x128xf32>
    %12 = arith.maximumf %10, %11 : vector<16x128xf32>
    %13 = vector.extract_strided_slice %9 {offsets = [0, 128], sizes = [16, 128], strides = [1, 1]} : vector<16x256xf32> to vector<16x128xf32>
    %cst_6 = arith.constant 5.000000e-01 : f32
    %14 = vector.broadcast %cst_6 : f32 to vector<16x128xf32>
    %15 = arith.mulf %14, %13 : vector<16x128xf32>
    %16 = math.tanh %15 : vector<16x128xf32>
    %cst_7 = arith.constant 5.000000e-01 : f32
    %17 = vector.broadcast %cst_7 : f32 to vector<16x128xf32>
    %18 = arith.mulf %17, %16 : vector<16x128xf32>
    %cst_8 = arith.constant 5.000000e-01 : f32
    %19 = vector.broadcast %cst_8 : f32 to vector<16x128xf32>
    %20 = arith.addf %18, %19 : vector<16x128xf32>
    %21 = arith.subf %12, %0 : vector<16x128xf32>
    %22 = arith.mulf %20, %21 : vector<16x128xf32>
    %23 = arith.addf %0, %22 : vector<16x128xf32>
    %c1_i32 = arith.constant 1 : i32
    %24 = arith.index_cast %c1_i32 : i32 to index
    %c0_9 = arith.constant 0 : index
    %c0_10 = arith.constant 0 : index
    %25 = vector.load %arg2[%24, %c0_9, %c0_10] : memref<2x128x256xf32, #tpu.memory_space<vmem>>, vector<1x128x256xf32>
    %26 = vector.shape_cast %25 : vector<1x128x256xf32> to vector<128x256xf32>
    %27 = arith.index_cast %c1_i32 : i32 to index
    %c0_11 = arith.constant 0 : index
    %c0_12 = arith.constant 0 : index
    %28 = vector.load %arg3[%27, %c0_11, %c0_12] : memref<2x1x256xf32, #tpu.memory_space<vmem>>, vector<1x1x256xf32>
    %29 = vector.shape_cast %28 : vector<1x1x256xf32> to vector<1x256xf32>
    %cst_13 = arith.constant dense<0.000000e+00> : vector<16x256xf32>
    %30 = tpu.matmul %23, %26, %cst_13 {dimension_numbers = #tpu.dot_dimension_numbers<[1], [0], [0], [1], [0, 0, 1, 1], [], []>} : vector<16x128xf32>, vector<128x256xf32>, vector<16x256xf32> -> vector<16x256xf32>
    %31 = vector.broadcast %29 : vector<1x256xf32> to vector<16x256xf32>
    %32 = arith.addf %30, %31 : vector<16x256xf32>
    %33 = vector.extract_strided_slice %32 {offsets = [0, 0], sizes = [16, 128], strides = [1, 1]} : vector<16x256xf32> to vector<16x128xf32>
    %cst_14 = arith.constant 0.000000e+00 : f32
    %34 = vector.broadcast %cst_14 : f32 to vector<16x128xf32>
    %35 = arith.maximumf %33, %34 : vector<16x128xf32>
    %36 = vector.extract_strided_slice %32 {offsets = [0, 128], sizes = [16, 128], strides = [1, 1]} : vector<16x256xf32> to vector<16x128xf32>
    %cst_15 = arith.constant 5.000000e-01 : f32
    %37 = vector.broadcast %cst_15 : f32 to vector<16x128xf32>
    %38 = arith.mulf %37, %36 : vector<16x128xf32>
    %39 = math.tanh %38 : vector<16x128xf32>
    %cst_16 = arith.constant 5.000000e-01 : f32
    %40 = vector.broadcast %cst_16 : f32 to vector<16x128xf32>
    %41 = arith.mulf %40, %39 : vector<16x128xf32>
    %cst_17 = arith.constant 5.000000e-01 : f32
    %42 = vector.broadcast %cst_17 : f32 to vector<16x128xf32>
    %43 = arith.addf %41, %42 : vector<16x128xf32>
    %44 = arith.subf %35, %23 : vector<16x128xf32>
    %45 = arith.mulf %43, %44 : vector<16x128xf32>
    %46 = arith.addf %23, %45 : vector<16x128xf32>
    %c2_i32 = arith.constant 2 : i32
    %c0_18 = arith.constant 0 : index
    %c0_19 = arith.constant 0 : index
    %47 = vector.load %arg4[%c0_18, %c0_19] : memref<16x128xf32, #tpu.memory_space<vmem>>, vector<16x128xf32>
    tpu.vector_store %arg4[%c0_18, %c0_19], %46 {strides = array<i32>} : memref<16x128xf32, #tpu.memory_space<vmem>>, vector<16x128xf32>,
    return
  }
  func.func @transform_0(%arg0: i32) -> (i32, i32) {
    %c0_i32 = arith.constant 0 : i32
    %c0_i32_0 = arith.constant 0 : i32
    return %arg0, %c0_i32 : i32, i32
  }
  func.func @transform_1(%arg0: i32) -> (i32, i32, i32) {
    %c0_i32 = arith.constant 0 : i32
    %c0_i32_0 = arith.constant 0 : i32
    %c0_i32_1 = arith.constant 0 : i32
    %c0_i32_2 = arith.constant 0 : i32
    return %c0_i32, %c0_i32_0, %c0_i32_1 : i32, i32, i32
  }
  func.func @transform_2(%arg0: i32) -> (i32, i32, i32) {
    %c0_i32 = arith.constant 0 : i32
    %c0_i32_0 = arith.constant 0 : i32
    %c0_i32_1 = arith.constant 0 : i32
    %c0_i32_2 = arith.constant 0 : i32
    return %c0_i32, %c0_i32_0, %c0_i32_1 : i32, i32, i32
  }
  func.func @transform_3(%arg0: i32) -> (i32, i32) {
    %c0_i32 = arith.constant 0 : i32
    %c0_i32_0 = arith.constant 0 : i32
    return %arg0, %c0_i32 : i32, i32
  }
}

</mosaic_0001>

<bundles_post_ra>
// kernel: tpu_custom_call.1
= control target key start
LH: loop header
LB: loop body
LE: loop exit
PB: predicated region body
PF: predicated region fallthrough
CT: control target
= control target key end

     0   :  { %8 = vsyncpa [#allocation3], 0  ;;  %s584_s0 = inlined_call_operand.hbm [shape: f32[16,128], index: 0, kind: input, shape index: {}]   ;;  %s585_s1 = inlined_call_operand.hbm [shape: f32[2,128,256], index: 1, kind: input, shape index: {}]   ;;  %s586_s2 = inlined_call_operand.vmem [shape: f32[2,1,256], index: 2, kind: input, shape index: {}]   ;;  %s587_s3 = inlined_call_operand.hbm [shape: f32[16,128], index: 3, kind: output, shape index: {}]  }
   0x1   :  { %9 = vsyncpa [#allocation6], 0 }
   0x2   :  { %10 = vsyncpa [#allocation4], 0  ;;  %s494_s12 = smov [#allocation2]   ;;  %s422_s16 = scalar_lea.hbm %s584_s0, 256 }
   0x3   :  { %s16_s13 = sshll.u32 %s494_s12, 4  ;;  %p423_p0 = scmp.ne.s32.totalorder %s584_s0, %s422_s16  ;;  %s17_s13 = int_to_ptr.vmem [resolvable:$true] %s16_s13 }
   0x4   :  { %p426_p1 = scmp.lt.u32.totalorder %s422_s16, %s584_s0 }
   0x6   :  { %p428_p2 = pnand %p426_p1, %p423_p0 }
   0x8   :  { %431 = shalt.err (!%p428_p2)
}
   0x9   :  { %s432_s21 = scalar_lea.vmem %s17_s13, 256  ;;  %p437_p4 = scmp.lt.s32.totalorder %s17_s13, %s17_s13 }
   0xa   :  { %p433_p3 = scmp.ne.s32.totalorder %s17_s13, %s432_s21  ;;  %p438_p5 = scmp.lt.s32.totalorder %s432_s21, %s432_s21 }
   0xc   :  { %p439_p6 = por %p438_p5, %p437_p4 }
   0xe   :  { %p440_p7 = pnand %p439_p6, %p433_p3 }
  0x10   :  { %443 = shalt.err (!%p440_p7)
}
  0x11   :  { %s495_s22 = smov 128   ;;  %s496_s23 = smov 8  }
  0x12   :  { %22 = dma.hbm_to_vmem [thread:$0]  %s584_s0, 256, %s17_s13, [#allocation3], %s495_s22, %s495_s22, %s496_s23  }
  0x13   :  { %s497_s26 = smov [#allocation5]   ;;  %s444_s30 = scalar_lea.hbm %s585_s1, 8192 }
  0x14   :  { %s28_s27 = sshll.u32 %s497_s26, 4  ;;  %p445_p8 = scmp.ne.s32.totalorder %s585_s1, %s444_s30  ;;  %s29_s27 = int_to_ptr.vmem [resolvable:$true] %s28_s27 }
  0x15   :  { %p448_p9 = scmp.lt.u32.totalorder %s444_s30, %s585_s1 }
  0x17   :  { %p450_p10 = pnand %p448_p9, %p445_p8 }
  0x19   :  { %453 = shalt.err (!%p450_p10)
}
  0x1a   :  { %s454_s8 = scalar_lea.vmem %s29_s27, 8192  ;;  %p459_p12 = scmp.lt.s32.totalorder %s29_s27, %s29_s27 }
  0x1b   :  { %p455_p11 = scmp.ne.s32.totalorder %s29_s27, %s454_s8  ;;  %p460_p13 = scmp.lt.s32.totalorder %s454_s8, %s454_s8 }
  0x1d   :  { %p461_p0 = por %p460_p13, %p459_p12 }
  0x1f   :  { %p462_p1 = pnand %p461_p0, %p455_p11 }
  0x21   :  { %465 = shalt.err (!%p462_p1)
}
  0x22   :  { %s498_s0 = smov 256   ;;  %s499_s9 = smov 16  }
  0x23   :  { %34 = dma.hbm_to_vmem [thread:$0]  %s585_s1, 8192, %s29_s27, [#allocation6], %s498_s0, %s498_s0, %s499_s9  }
  0x24   :  { %488 = dma.done.wait [#allocation3], 256  }
  0x25   :  { %489 = vsyncadd [#allocation3], 4294967040 }
  0x26   :  { %490 = dma.done.wait [#allocation6], 8192  }
  0x27   :  { %491 = vsyncadd [#allocation6], 4294959104  ;;  %v500_v0 = vmov 0.0   ;;  %v46_v1 = vld [vmem:[#allocation5 + $0x8] sm:$0xff]  ;;  %v48_v2 = vld [vmem:[#allocation5 + $0x18] sm:$0xff] }
  0x28   :  { %153 = vmatprep.mubr.f32.mxu0 %v500_v0  ;;  %292 = vmatprep.mubr.f32.mxu1 %v500_v0  ;;  %v45_v3 = vld [vmem:[#allocation5] sm:$0xff]  ;;  %v342_v4 = vpack.c.bf16 %v48_v2, %v46_v1  ;;  %v47_v5 = vld [vmem:[#allocation5 + $0x10] sm:$0xff]  ;;  %v50_v6 = vld [vmem:[#allocation5 + $0x28] sm:$0xff] }
  0x29   :  { %v52_v7 = vld [vmem:[#allocation5 + $0x38] sm:$0xff]  ;;  %v344_v8 = vpack.c.bf16 %v47_v5, %v45_v3  ;;  %v49_v10 = vld [vmem:[#allocation5 + $0x20] sm:$0xff]  ;;  %v51_v11 = vld [vmem:[#allocation5 + $0x30] sm:$0xff] }
  0x2a   :  { %v346_v9 = vpack.c.bf16 %v52_v7, %v50_v6  ;;  %v54_v12 = vld [vmem:[#allocation5 + $0x48] sm:$0xff]  ;;  %343 = vmatprep.subr.bf16.mxu0 %v342_v4  ;;  %v56_v13 = vld [vmem:[#allocation5 + $0x58] sm:$0xff]  ;;  %v348_v14 = vpack.c.bf16 %v51_v11, %v49_v10  ;;  %v53_v16 = vld [vmem:[#allocation5 + $0x40] sm:$0xff] }
  0x2b   :  { %345 = vmatpush1.bf16.msra.mxu0 %v344_v8  ;;  %v350_v15 = vpack.c.bf16 %v56_v13, %v54_v12  ;;  %v55_v17 = vld [vmem:[#allocation5 + $0x50] sm:$0xff]  ;;  %v58_v18 = vld [vmem:[#allocation5 + $0x68] sm:$0xff]  ;;  %v60_v19 = vld [vmem:[#allocation5 + $0x78] sm:$0xff] }
  0x2c   :  { %347 = vmatprep.subr.bf16.mxu0 %v346_v9  ;;  %v352_v20 = vpack.c.bf16 %v55_v17, %v53_v16  ;;  %v354_v21 = vpack.c.bf16 %v60_v19, %v58_v18  ;;  %v57_v22 = vld [vmem:[#allocation5 + $0x60] sm:$0xff]  ;;  %v59_v23 = vld [vmem:[#allocation5 + $0x70] sm:$0xff]  ;;  %v62_v24 = vld [vmem:[#allocation5 + $0x88] sm:$0xff] }
  0x2d   :  { %v64_v25 = vld [vmem:[#allocation5 + $0x98] sm:$0xff]  ;;  %v61_v26 = vld [vmem:[#allocation5 + $0x80] sm:$0xff]  ;;  %v63_v27 = vld [vmem:[#allocation5 + $0x90] sm:$0xff]  ;;  %v356_v30 = vpack.c.bf16 %v59_v23, %v57_v22 }
  0x2e   :  { %v184_v28 = vld [vmem:[#allocation5 + $0x108] sm:$0xff]  ;;  %v186_v29 = vld [vmem:[#allocation5 + $0x118] sm:$0xff]  ;;  %v183_v32 = vld [vmem:[#allocation5 + $0x100] sm:$0xff]  ;;  %v358_v35 = vpack.c.bf16 %v64_v25, %v62_v24  ;;  %v360_v44 = vpack.c.bf16 %v63_v27, %v61_v26 }
  0x2f   :  { %349 = vmatpush1.bf16.msra.mxu0 %v348_v14  ;;  %v374_v31 = vpack.c.bf16 %v186_v29, %v184_v28  ;;  %v185_v33 = vld [vmem:[#allocation5 + $0x110] sm:$0xff]  ;;  %v188_v34 = vld [vmem:[#allocation5 + $0x128] sm:$0xff]  ;;  %v190_v37 = vld [vmem:[#allocation5 + $0x138] sm:$0xff] }
  0x30   :  { %351 = vmatprep.subr.bf16.mxu0 %v350_v15  ;;  %v376_v36 = vpack.c.bf16 %v185_v33, %v183_v32  ;;  %v187_v38 = vld [vmem:[#allocation5 + $0x120] sm:$0xff]  ;;  %v189_v39 = vld [vmem:[#allocation5 + $0x130] sm:$0xff]  ;;  %v66_v40 = vld [vmem:[#allocation5 + $0xa8] sm:$0xff]  ;;  %v378_v42 = vpack.c.bf16 %v190_v37, %v188_v34 }
  0x31   :  { %v68_v41 = vld [vmem:[#allocation5 + $0xb8] sm:$0xff]  ;;  %375 = vmatprep.subr.bf16.mxu1 %v374_v31  ;;  %v380_v43 = vpack.c.bf16 %v189_v39, %v187_v38  ;;  %v65_v46 = vld [vmem:[#allocation5 + $0xa0] sm:$0xff]  ;;  %v67_v47 = vld [vmem:[#allocation5 + $0xb0] sm:$0xff] }
  0x32   :  { %377 = vmatpush1.bf16.msra.mxu1 %v376_v36  ;;  %v362_v45 = vpack.c.bf16 %v68_v41, %v66_v40  ;;  %v70_v48 = vld [vmem:[#allocation5 + $0xc8] sm:$0xff]  ;;  %v72_v49 = vld [vmem:[#allocation5 + $0xd8] sm:$0xff]  ;;  %v364_v50 = vpack.c.bf16 %v67_v47, %v65_v46  ;;  %v69_v52 = vld [vmem:[#allocation5 + $0xc0] sm:$0xff]  ;;  %v79_v36 = vlaneseq }
  0x33   :  { %353 = vmatpush1.bf16.msra.mxu0 %v352_v20  ;;  %379 = vmatprep.subr.bf16.mxu1 %v378_v42  ;;  %v366_v51 = vpack.c.bf16 %v72_v49, %v70_v48  ;;  %v71_v53 = vld [vmem:[#allocation5 + $0xd0] sm:$0xff]  ;;  %v74_v54 = vld [vmem:[#allocation5 + $0xe8] sm:$0xff]  ;;  %v76_v55 = vld [vmem:[#allocation5 + $0xf8] sm:$0xff] }
  0x34   :  { %355 = vmatprep.subr.bf16.mxu0 %v354_v21  ;;  %v368_v56 = vpack.c.bf16 %v71_v53, %v69_v52  ;;  %v370_v57 = vpack.c.bf16 %v76_v55, %v74_v54  ;;  %v73_v58 = vld [vmem:[#allocation5 + $0xe0] sm:$0xff]  ;;  %v75_v59 = vld [vmem:[#allocation5 + $0xf0] sm:$0xff]  ;;  %v555_v62 = vld [vmem:[#allocation2 + $0x8] sm:$0xff]  ;;  %v80_v37 = vshrl.u32 %v79_v36, 7 }
  0x35   :  { %v372_v60 = vpack.c.bf16 %v75_v59, %v73_v58  ;;  %v551_v61 = vld [vmem:[#allocation2] sm:$0xff]  ;;  %v192_v63 = vld [vmem:[#allocation5 + $0x148] sm:$0xff]  ;;  %v194_v1 = vld [vmem:[#allocation5 + $0x158] sm:$0xff] }
  0x36   :  { %381 = vmatpush1.bf16.msra.mxu1 %v380_v43  ;;  %v382_v2 = vpack.c.bf16 %v194_v1, %v192_v63  ;;  %v191_v3 = vld [vmem:[#allocation5 + $0x140] sm:$0xff]  ;;  %v193_v4 = vld [vmem:[#allocation5 + $0x150] sm:$0xff]  ;;  %v196_v6 = vld [vmem:[#allocation5 + $0x168] sm:$0xff]  ;;  %v85_v38 = vsub.s32 1, %v80_v37 }
  0x37   :  { %357 = vmatpush1.bf16.msra.mxu0 %v356_v30  ;;  %v384_v5 = vpack.c.bf16 %v193_v4, %v191_v3  ;;  %v198_v7 = vld [vmem:[#allocation5 + $0x178] sm:$0xff]  ;;  %v195_v9 = vld [vmem:[#allocation5 + $0x160] sm:$0xff]  ;;  %v197_v10 = vld [vmem:[#allocation5 + $0x170] sm:$0xff] }
  0x38   :  { %359 = vmatprep.subr.bf16.mxu0 %v358_v35  ;;  %383 = vmatprep.subr.bf16.mxu1 %v382_v2  ;;  %v386_v8 = vpack.c.bf16 %v198_v7, %v196_v6  ;;  %v388_v11 = vpack.c.bf16 %v197_v10, %v195_v9  ;;  %v200_v12 = vld [vmem:[#allocation5 + $0x188] sm:$0xff]  ;;  %v202_v13 = vld [vmem:[#allocation5 + $0x198] sm:$0xff]  ;;  %v199_v15 = vld [vmem:[#allocation5 + $0x180] sm:$0xff] }
  0x39   :  { %v390_v14 = vpack.c.bf16 %v202_v13, %v200_v12  ;;  %v201_v16 = vld [vmem:[#allocation5 + $0x190] sm:$0xff]  ;;  %v204_v18 = vld [vmem:[#allocation5 + $0x1a8] sm:$0xff]  ;;  %v206_v19 = vld [vmem:[#allocation5 + $0x1b8] sm:$0xff] }
  0x3a   :  { %385 = vmatpush1.bf16.msra.mxu1 %v384_v5  ;;  %v392_v17 = vpack.c.bf16 %v201_v16, %v199_v15  ;;  %v394_v20 = vpack.c.bf16 %v206_v19, %v204_v18  ;;  %v203_v21 = vld [vmem:[#allocation5 + $0x1a0] sm:$0xff]  ;;  %v205_v22 = vld [vmem:[#allocation5 + $0x1b0] sm:$0xff]  ;;  %v208_v24 = vld [vmem:[#allocation5 + $0x1c8] sm:$0xff] }
  0x3b   :  { %361 = vmatpush1.bf16.msra.mxu0 %v360_v44  ;;  %387 = vmatprep.subr.bf16.mxu1 %v386_v8  ;;  %v396_v23 = vpack.c.bf16 %v205_v22, %v203_v21  ;;  %v210_v25 = vld [vmem:[#allocation5 + $0x1d8] sm:$0xff]  ;;  %v207_v27 = vld [vmem:[#allocation5 + $0x1c0] sm:$0xff]  ;;  %v209_v28 = vld [vmem:[#allocation5 + $0x1d0] sm:$0xff]  ;;  %v81_v44 = vsub.s32 0, %v80_v37 }
  0x3c   :  { %363 = vmatprep.subr.bf16.mxu0 %v362_v45  ;;  %v398_v26 = vpack.c.bf16 %v210_v25, %v208_v24  ;;  %v400_v29 = vpack.c.bf16 %v209_v28, %v207_v27  ;;  %v212_v30 = vld [vmem:[#allocation5 + $0x1e8] sm:$0xff]  ;;  %v214_v31 = vld [vmem:[#allocation5 + $0x1f8] sm:$0xff]  ;;  %v211_v33 = vld [vmem:[#allocation5 + $0x1e0] sm:$0xff] }
  0x3d   :  { %v402_v32 = vpack.c.bf16 %v214_v31, %v212_v30  ;;  %v213_v34 = vld [vmem:[#allocation5 + $0x1f0] sm:$0xff] }
  0x3e   :  { %389 = vmatpush1.bf16.msra.mxu1 %v388_v11  ;;  %v404_v35 = vpack.c.bf16 %v213_v34, %v211_v33  ;;  %v77_v39 = vld [vmem:[%s586_s2] sm:$0x3]  ;;  %v341_v6 = vld [vmem:[%s586_s2 + $0x2] sm:$0x3]  ;;  %s501_s2 = smov [#allocation7]  }
  0x3f   :  { %365 = vmatpush1.bf16.msra.mxu0 %v364_v50  ;;  %391 = vmatprep.subr.bf16.mxu1 %v390_v14  ;;  %v86_v40 = vrot.slane %v77_v39, %v85_v38  ;;  %v82_v49 = vrot.slane %v77_v39, %v81_v44  ;;  %v225_v7 = vrot.slane %v341_v6, %v85_v38  ;;  %s328_s15 = sshll.u32 %s501_s2, 4  ;;  %s329_s15 = int_to_ptr.vmem [resolvable:$true] %s328_s15 }
  0x40   :  { %367 = vmatprep.subr.bf16.mxu0 %v366_v51  ;;  %v221_v14 = vrot.slane %v341_v6, %v81_v44  ;;  %s466_s16 = scalar_lea.vmem %s329_s15, 256  ;;  %p471_p3 = scmp.lt.s32.totalorder %s329_s15, %s329_s15 }
  0x41   :  { %p467_p2 = scmp.ne.s32.totalorder %s329_s15, %s466_s16  ;;  %p472_p4 = scmp.lt.s32.totalorder %s466_s16, %s466_s16 }
  0x42   :  { %393 = vmatpush1.bf16.msra.mxu1 %v392_v17 }
  0x43   :  { %369 = vmatpush1.bf16.msra.mxu0 %v368_v56  ;;  %395 = vmatprep.subr.bf16.mxu1 %v394_v20  ;;  %p473_p5 = por %p472_p4, %p471_p3 }
  0x44   :  { %371 = vmatprep.subr.bf16.mxu0 %v370_v57 }
  0x45   :  { %p474_p6 = pnand %p473_p5, %p467_p2 }
  0x46   :  { %397 = vmatpush1.bf16.msra.mxu1 %v396_v23 }
  0x47   :  { %373 = vmatpush1.bf16.msra.mxu0 %v372_v60  ;;  %399 = vmatprep.subr.bf16.mxu1 %v398_v26 }
  0x4a   :  { %154 = vmatmul.mubr.f32.vlgmr.msra.gmra.mrb[0].mxu0 %v551_v61  ;;  %401 = vmatpush1.bf16.msra.mxu1 %v400_v29 }
  0x4b   :  { %159 = vmatprep.mubr.f32.mxu0 %v500_v0  ;;  %403 = vmatprep.subr.bf16.mxu1 %v402_v32 }
  0x4e   :  { %160 = vmatmul.mubr.f32.gmra.mrb[2].mxu0 %v555_v62  ;;  %405 = vmatpush1.bf16.msra.mxu1 %v404_v35 }
 0x11d   :  { %v155_v41 = vpop.f32.mrb[0].mxu0 }
 0x11e   :  { %v157_v42 = vpop.f32.mrb[1].mxu0  ;;  %v156_v51 = vadd.f32 %v155_v41, %v82_v49 }
 0x11f   :  { %v158_v43 = vadd.f32 %v157_v42, %v86_v40 }
 0x120   :  { %v166_v52 = vmax.f32 %v156_v51, 0.0 }
 0x121   :  { %v168_v45 = vmul.f32 0.5, %v158_v43  ;;  %v161_v46 = vpop.f32.mrb[2].mxu0 }
 0x122   :  { %v163_v47 = vpop.f32.mrb[3].mxu0  ;;  %v162_v53 = vadd.f32 %v161_v46, %v82_v49  ;;  %v176_v56 = vsub.f32 %v166_v52, %v551_v61 }
 0x123   :  { %414 = vtanh.f32 %v168_v45  ;;  %v164_v48 = vadd.f32 %v163_v47, %v86_v40 }
 0x124   :  { %v167_v58 = vmax.f32 %v162_v53, 0.0 }
 0x125   :  { %v169_v50 = vmul.f32 0.5, %v164_v48 }
 0x126   :  { %v177_v1 = vsub.f32 %v167_v58, %v555_v62 }
 0x127   :  { %416 = vtanh.f32 %v169_v50 }
 0x12d   :  { %v415_v54 = vpop.eup %414 }
 0x12e   :  { %v172_v55 = vmul.f32 0.5, %v415_v54 }
 0x130   :  { %v174_v57 = vadd.f32 0.5, %v172_v55 }
 0x131   :  { %v417_v59 = vpop.eup %416 }
 0x132   :  { %v173_v60 = vmul.f32 0.5, %v417_v59  ;;  %v178_v63 = vmul.f32 %v176_v56, %v174_v57 }
 0x134   :  { %v175_v2 = vadd.f32 0.5, %v173_v60  ;;  %v180_v3 = vadd.f32 %v178_v63, %v551_v61 }
 0x136   :  { %293 = vmatmul.mubr.f32.vlgmr.msra.gmra.mrb[0].mxu1 %v180_v3  ;;  %v179_v4 = vmul.f32 %v177_v1, %v175_v2 }
 0x137   :  { %298 = vmatprep.mubr.f32.mxu1 %v500_v0 }
 0x138   :  { %v181_v5 = vadd.f32 %v179_v4, %v555_v62 }
 0x13a   :  { %299 = vmatmul.mubr.f32.gmra.mrb[2].mxu1 %v181_v5 }
 0x209   :  { %v294_v8 = vpop.f32.mrb[0].mxu1 }
 0x20a   :  { %v296_v9 = vpop.f32.mrb[1].mxu1  ;;  %v295_v0 = vadd.f32 %v294_v8, %v221_v14 }
 0x20b   :  { %v297_v10 = vadd.f32 %v296_v9, %v225_v7 }
 0x20c   :  { %v305_v16 = vmax.f32 %v295_v0, 0.0 }
 0x20d   :  { %v307_v11 = vmul.f32 0.5, %v297_v10  ;;  %v300_v12 = vpop.f32.mrb[2].mxu1 }
 0x20e   :  { %v302_v13 = vpop.f32.mrb[3].mxu1  ;;  %v301_v62 = vadd.f32 %v300_v12, %v221_v14  ;;  %v315_v19 = vsub.f32 %v305_v16, %v180_v3 }
 0x20f   :  { %418 = vtanh.f32 %v307_v11  ;;  %v303_v61 = vadd.f32 %v302_v13, %v225_v7 }
 0x210   :  { %v306_v21 = vmax.f32 %v301_v62, 0.0 }
 0x211   :  { %v308_v15 = vmul.f32 0.5, %v303_v61 }
 0x212   :  { %v316_v25 = vsub.f32 %v306_v21, %v181_v5 }
 0x213   :  { %420 = vtanh.f32 %v308_v15 }
 0x219   :  { %v419_v17 = vpop.eup %418 }
 0x21a   :  { %v311_v18 = vmul.f32 0.5, %v419_v17 }
 0x21c   :  { %v313_v20 = vadd.f32 0.5, %v311_v18 }
 0x21d   :  { %v421_v22 = vpop.eup %420 }
 0x21e   :  { %v317_v23 = vmul.f32 %v315_v19, %v313_v20  ;;  %v312_v24 = vmul.f32 0.5, %v421_v22 }
 0x220   :  { %v314_v26 = vadd.f32 0.5, %v312_v24  ;;  %v319_v27 = vadd.f32 %v317_v23, %v180_v3 }
 0x222   :  { %v318_v28 = vmul.f32 %v316_v25, %v314_v26  ;;  %321 = vst [vmem:[#allocation7] sm:$0xff] %v319_v27 }
 0x224   :  { %v320_v29 = vadd.f32 %v318_v28, %v181_v5 }
 0x226   :  { %322 = vst [vmem:[#allocation7 + $0x8] sm:$0xff] %v320_v29 }
 0x227   :  { %477 = shalt.err (!%p474_p6)
}
 0x228   :  { %s478_s19 = scalar_lea.hbm %s587_s3, 256 }
 0x229   :  { %p479_p7 = scmp.ne.s32.totalorder %s587_s3, %s478_s19  ;;  %p482_p8 = scmp.lt.u32.totalorder %s478_s19, %s587_s3 }
 0x22b   :  { %p484_p9 = pnand %p482_p8, %p479_p7 }
 0x22d   :  { %487 = shalt.err (!%p484_p9)
}
 0x22e   :  { %334 = dma.vmem_to_hbm [thread:$0]  %s329_s15, 256, %s587_s3, [#allocation4], %s495_s22, %s495_s22, %s496_s23  }
 0x22f   :  { %492 = dma.done.wait [#allocation4], 256  }
 0x230   :  { %493 = vsyncadd [#allocation4], 4294967040 }
 0x231   :  { %338 = vsyncpa [#allocation3], 1 }
 0x232   :  { %339 = vsyncpa [#allocation6], 1 }
 0x233   :  { %340 = vsyncpa [#allocation4], 1 }

</bundles_post_ra>
